<compile_context>
chip_gen: v6e
topology: v6e:2x2x1
jax: 0.10.0
libtpu: 0.0.40
codegen_flags: <defaults>
</compile_context>

<pallas_src>
import jax
import jax.numpy as jnp
from jax.experimental import pallas as pl
from jax.experimental.pallas import tpu as pltpu

LATENT = 10
HIDDEN = 512
LATENT_PAD = 128          # lane width; mu / logvar / z are carried lane-dense


def _round_up(n, m):
    return ((n + m - 1) // m) * m


def _vae_kernel(x_ref, eps_ref,
                w1_ref, b1_ref,
                wml_ref, bml_ref,
                w3_ref, b3_ref,
                w4_ref, b4_ref,
                recon_ref, ml_ref):
    # encoder: fc1 + relu  (bf16 operands, f32 accumulate)
    x = x_ref[...].astype(jnp.bfloat16)
    h1 = jnp.dot(x, w1_ref[...], preferred_element_type=jnp.float32) + b1_ref[...]
    h1 = jnp.maximum(h1, 0.0)

    # fused fc21 | fc22 -> one lane-dense [TILE_B, 2*LATENT_PAD] slab
    ml = jnp.dot(h1.astype(jnp.bfloat16), wml_ref[...],
                 preferred_element_type=jnp.float32) + bml_ref[...]
    mu = ml[:, :LATENT_PAD]
    logvar = ml[:, LATENT_PAD:]

    # reparameterize: z = eps * exp(0.5 * logvar) + mu
    # (padded columns are exactly 0: zero weights/bias/eps -> 0*exp(0)+0)
    z = eps_ref[...] * jnp.exp(0.5 * logvar) + mu

    # decoder: fc3 + relu, fc4 + sigmoid
    h3 = jnp.dot(z.astype(jnp.bfloat16), w3_ref[...],
                 preferred_element_type=jnp.float32) + b3_ref[...]
    h3 = jnp.maximum(h3, 0.0)
    logits = jnp.dot(h3.astype(jnp.bfloat16), w4_ref[...],
                     preferred_element_type=jnp.float32) + b4_ref[...]
    # sigmoid via EUP exp + reciprocal (no explicit VALU divide); exact
    # reciprocal keeps us within the correctness tolerance.
    recon = pl.reciprocal(1.0 + jnp.exp(-logits), approx=False)

    recon_ref[...] = recon
    ml_ref[...] = ml


def pack_params(params):
    """One-time packing: transpose to [in, out], fuse fc21/fc22, pad LATENT
    dims to the 128-lane width, cast weights to bf16 (biases stay f32)."""
    (w1, b1), (w21, b21), (w22, b22), (w3, b3), (w4, b4) = params

    wml = jnp.zeros((HIDDEN, 2 * LATENT_PAD), jnp.float32)
    wml = wml.at[:, :LATENT].set(w21.T)
    wml = wml.at[:, LATENT_PAD:LATENT_PAD + LATENT].set(w22.T)
    bml = jnp.zeros((1, 2 * LATENT_PAD), jnp.float32)
    bml = bml.at[0, :LATENT].set(b21)
    bml = bml.at[0, LATENT_PAD:LATENT_PAD + LATENT].set(b22)

    w3p = jnp.zeros((LATENT_PAD, HIDDEN), jnp.float32).at[:LATENT].set(w3.T)

    return (
        w1.T.astype(jnp.bfloat16), b1.reshape(1, -1).astype(jnp.float32),
        wml.astype(jnp.bfloat16), bml,
        w3p.astype(jnp.bfloat16), b3.reshape(1, -1).astype(jnp.float32),
        w4.T.astype(jnp.bfloat16), b4.reshape(1, -1).astype(jnp.float32),
    )


def vae_forward(x, eps, packed, *, tile_b=256):
    """x: [B, input_size] f32, eps: [B, LATENT] f32 (standard-normal noise).
    `packed` is the output of pack_params (weights already transposed/fused)."""
    B, D = x.shape
    w1p, b1p, wmlp, bmlp, w3p, b3p, w4p, b4p = packed

    # batch tile: multiple of 8 (f32 sublanes), no bigger than needed
    TB = min(_round_up(tile_b, 8), _round_up(B, 8))
    B_pad = _round_up(B, TB)

    x_in = x if B_pad == B else jnp.zeros((B_pad, D), x.dtype).at[:B].set(x)
    eps_in = jnp.zeros((B_pad, LATENT_PAD), jnp.float32).at[:B, :LATENT].set(eps)

    grid = (B_pad // TB,)

    def batch_spec(ncols):
        return pl.BlockSpec((TB, ncols), lambda i: (i, 0))

    def const_spec(arr):
        return pl.BlockSpec(arr.shape, lambda i: (0, 0))

    in_specs = [
        batch_spec(D),                     # x
        batch_spec(LATENT_PAD),            # eps (lane-padded)
        const_spec(w1p), const_spec(b1p),  # weights: VMEM-resident across grid
        const_spec(wmlp), const_spec(bmlp),
        const_spec(w3p), const_spec(b3p),
        const_spec(w4p), const_spec(b4p),
    ]
    out_specs = (
        batch_spec(D),                     # recon
        batch_spec(2 * LATENT_PAD),        # mu | logvar slab (lane-dense)
    )
    out_shape = (
        jax.ShapeDtypeStruct((B_pad, D), jnp.float32),
        jax.ShapeDtypeStruct((B_pad, 2 * LATENT_PAD), jnp.float32),
    )

    flops = 2 * B_pad * (D * HIDDEN + HIDDEN * 2 * LATENT_PAD
                         + LATENT_PAD * HIDDEN + HIDDEN * D)
    transcendentals = B_pad * (LATENT_PAD + 2 * D)
    bytes_accessed = (
        x_in.size * x_in.dtype.itemsize + eps_in.size * 4
        + sum(int(p.size) * p.dtype.itemsize for p in packed)
        + B_pad * D * 4 + B_pad * 2 * LATENT_PAD * 4
    )

    recon_pad, ml_pad = pl.pallas_call(
        _vae_kernel,
        out_shape=out_shape,
        grid=grid,
        in_specs=in_specs,
        out_specs=out_specs,
        compiler_params=pltpu.CompilerParams(
            dimension_semantics=("parallel",),
        ),
        cost_estimate=pl.CostEstimate(
            flops=flops,
            transcendentals=transcendentals,
            bytes_accessed=bytes_accessed,
        ),
    )(x_in, eps_in, *packed)

    recon = recon_pad[:B]
    mu = ml_pad[:B, :LATENT]
    logvar = ml_pad[:B, LATENT_PAD:LATENT_PAD + LATENT]
    return recon, mu, logvar


def _init_linear(key, out_features, in_features):
    """PyTorch nn.Linear default init: U(-1/sqrt(fan_in), 1/sqrt(fan_in))."""
    kw, kb = jax.random.split(key)
    bound = 1.0 / jnp.sqrt(jnp.float32(in_features))
    w = jax.random.uniform(kw, (out_features, in_features), jnp.float32, -bound, bound)
    b = jax.random.uniform(kb, (out_features,), jnp.float32, -bound, bound)
    return w, b


def init_params(key, input_size):
    k1, k21, k22, k3, k4 = jax.random.split(key, 5)
    return (
        _init_linear(k1, HIDDEN, input_size),   # fc1
        _init_linear(k21, LATENT, HIDDEN),      # fc21
        _init_linear(k22, LATENT, HIDDEN),      # fc22
        _init_linear(k3, HIDDEN, LATENT),       # fc3
        _init_linear(k4, input_size, HIDDEN),   # fc4
    )


def _reference(x, eps, params):
    """Pure-JAX reference mirroring the PyTorch forward.  Matmul operands are
    cast to bf16 (accumulate f32) to match the kernel's MXU precision, so the
    comparison isolates kernel correctness from the bf16 dtype choice."""
    def lin(a, w, b):
        return jnp.dot(a.astype(jnp.bfloat16), w.T.astype(jnp.bfloat16),
                       preferred_element_type=jnp.float32) + b

    (w1, b1), (w21, b21), (w22, b22), (w3, b3), (w4, b4) = params
    h1 = jnp.maximum(lin(x, w1, b1), 0.0)
    mu = lin(h1, w21, b21)
    logvar = lin(h1, w22, b22)
    z = eps * jnp.exp(0.5 * logvar) + mu
    h3 = jnp.maximum(lin(z, w3, b3), 0.0)
    recon = 1.0 / (1.0 + jnp.exp(-lin(h3, w4, b4)))
    return recon, mu, logvar


if __name__ == "__main__":
    key = jax.random.PRNGKey(0)
    k_param, k_x, k_eps = jax.random.split(key, 3)

    B = 2
    INPUT_SIZE = 256

    params = init_params(k_param, INPUT_SIZE)
    packed = pack_params(params)   # one-time: transpose / fuse / pad / bf16-cast

    x = jax.random.uniform(k_x, (B, INPUT_SIZE), jnp.float32)   # flattened inputs in [0,1)
    eps = jax.random.normal(k_eps, (B, LATENT), jnp.float32)    # reparameterization noise

    recon_x, mu, logvar = vae_forward(x, eps, packed)
    jax.block_until_ready((recon_x, mu, logvar))

    # sanity check against the precision-matched pure-JAX reference
    r_ref, mu_ref, lv_ref = _reference(x, eps, params)
    assert recon_x.shape == (B, INPUT_SIZE)
    assert mu.shape == (B, LATENT) and logvar.shape == (B, LATENT)
    assert jnp.allclose(recon_x, r_ref, atol=1e-3, rtol=1e-3)
    assert jnp.allclose(mu, mu_ref, atol=1e-3, rtol=1e-3)
    assert jnp.allclose(logvar, lv_ref, atol=1e-3, rtol=1e-3)

    print("KERNEL_OK")
</pallas_src>

<mosaic_0001>
module attributes {stable_mosaic.version = 11 : i64} {
  func.func @_vae_kernel(%arg0: i32, %arg1: memref<8x256xf32, #tpu.memory_space<vmem>>, %arg2: memref<8x128xf32, #tpu.memory_space<vmem>>, %arg3: memref<256x512xbf16, #tpu.memory_space<vmem>>, %arg4: memref<1x512xf32, #tpu.memory_space<vmem>>, %arg5: memref<512x256xbf16, #tpu.memory_space<vmem>>, %arg6: memref<1x256xf32, #tpu.memory_space<vmem>>, %arg7: memref<128x512xbf16, #tpu.memory_space<vmem>>, %arg8: memref<1x512xf32, #tpu.memory_space<vmem>>, %arg9: memref<512x256xbf16, #tpu.memory_space<vmem>>, %arg10: memref<1x256xf32, #tpu.memory_space<vmem>>, %arg11: memref<8x256xf32, #tpu.memory_space<vmem>>, %arg12: memref<8x256xf32, #tpu.memory_space<vmem>>) attributes {dimension_semantics = [#tpu.dimension_semantics<parallel>], iteration_bounds = array<i64: 1>, scalar_prefetch = 0 : i64, scratch_operands = 0 : i64, tpu.core_type = #tpu.core_type<tc>, window_params = [{transform_indices = @transform_0, window_bounds = array<i64: 8, 256>}, {transform_indices = @transform_1, window_bounds = array<i64: 8, 128>}, {pipeline_mode = #tpu.pipeline_mode<synchronous>, transform_indices = @transform_2, window_bounds = array<i64: 256, 512>}, {pipeline_mode = #tpu.pipeline_mode<synchronous>, transform_indices = @transform_3, window_bounds = array<i64: 1, 512>}, {pipeline_mode = #tpu.pipeline_mode<synchronous>, transform_indices = @transform_4, window_bounds = array<i64: 512, 256>}, {pipeline_mode = #tpu.pipeline_mode<synchronous>, transform_indices = @transform_5, window_bounds = array<i64: 1, 256>}, {pipeline_mode = #tpu.pipeline_mode<synchronous>, transform_indices = @transform_6, window_bounds = array<i64: 128, 512>}, {pipeline_mode = #tpu.pipeline_mode<synchronous>, transform_indices = @transform_7, window_bounds = array<i64: 1, 512>}, {pipeline_mode = #tpu.pipeline_mode<synchronous>, transform_indices = @transform_8, window_bounds = array<i64: 512, 256>}, {pipeline_mode = #tpu.pipeline_mode<synchronous>, transform_indices = @transform_9, window_bounds = array<i64: 1, 256>}, {transform_indices = @transform_10, window_bounds = array<i64: 8, 256>}, {transform_indices = @transform_11, window_bounds = array<i64: 8, 256>}]} {
    %c0 = arith.constant 0 : index
    %c0_0 = arith.constant 0 : index
    %0 = vector.load %arg1[%c0, %c0_0] : memref<8x256xf32, #tpu.memory_space<vmem>>, vector<8x256xf32>
    %1 = arith.truncf %0 : vector<8x256xf32> to vector<8x256xbf16>
    %c0_1 = arith.constant 0 : index
    %c0_2 = arith.constant 0 : index
    %2 = vector.load %arg3[%c0_1, %c0_2] : memref<256x512xbf16, #tpu.memory_space<vmem>>, vector<256x512xbf16>
    %cst = arith.constant dense<0.000000e+00> : vector<8x512xf32>
    %3 = tpu.matmul %1, %2, %cst {dimension_numbers = #tpu.dot_dimension_numbers<[1], [0], [0], [1], [0, 0, 1, 1], [], []>} : vector<8x256xbf16>, vector<256x512xbf16>, vector<8x512xf32> -> vector<8x512xf32>
    %c0_3 = arith.constant 0 : index
    %c0_4 = arith.constant 0 : index
    %4 = vector.load %arg4[%c0_3, %c0_4] : memref<1x512xf32, #tpu.memory_space<vmem>>, vector<1x512xf32>
    %5 = vector.broadcast %4 : vector<1x512xf32> to vector<8x512xf32>
    %6 = arith.addf %3, %5 : vector<8x512xf32>
    %cst_5 = arith.constant 0.000000e+00 : f32
    %7 = vector.broadcast %cst_5 : f32 to vector<8x512xf32>
    %8 = arith.maximumf %6, %7 : vector<8x512xf32>
    %9 = arith.truncf %8 : vector<8x512xf32> to vector<8x512xbf16>
    %c0_6 = arith.constant 0 : index
    %c0_7 = arith.constant 0 : index
    %10 = vector.load %arg5[%c0_6, %c0_7] : memref<512x256xbf16, #tpu.memory_space<vmem>>, vector<512x256xbf16>
    %cst_8 = arith.constant dense<0.000000e+00> : vector<8x256xf32>
    %11 = tpu.matmul %9, %10, %cst_8 {dimension_numbers = #tpu.dot_dimension_numbers<[1], [0], [0], [1], [0, 0, 1, 1], [], []>} : vector<8x512xbf16>, vector<512x256xbf16>, vector<8x256xf32> -> vector<8x256xf32>
    %c0_9 = arith.constant 0 : index
    %c0_10 = arith.constant 0 : index
    %12 = vector.load %arg6[%c0_9, %c0_10] : memref<1x256xf32, #tpu.memory_space<vmem>>, vector<1x256xf32>
    %13 = vector.broadcast %12 : vector<1x256xf32> to vector<8x256xf32>
    %14 = arith.addf %11, %13 : vector<8x256xf32>
    %15 = vector.extract_strided_slice %14 {offsets = [0, 0], sizes = [8, 128], strides = [1, 1]} : vector<8x256xf32> to vector<8x128xf32>
    %16 = vector.extract_strided_slice %14 {offsets = [0, 128], sizes = [8, 128], strides = [1, 1]} : vector<8x256xf32> to vector<8x128xf32>
    %c0_11 = arith.constant 0 : index
    %c0_12 = arith.constant 0 : index
    %17 = vector.load %arg2[%c0_11, %c0_12] : memref<8x128xf32, #tpu.memory_space<vmem>>, vector<8x128xf32>
    %cst_13 = arith.constant 5.000000e-01 : f32
    %18 = vector.broadcast %cst_13 : f32 to vector<8x128xf32>
    %19 = arith.mulf %18, %16 : vector<8x128xf32>
    %20 = math.exp %19 : vector<8x128xf32>
    %21 = arith.mulf %17, %20 : vector<8x128xf32>
    %22 = arith.addf %21, %15 : vector<8x128xf32>
    %23 = arith.truncf %22 : vector<8x128xf32> to vector<8x128xbf16>
    %c0_14 = arith.constant 0 : index
    %c0_15 = arith.constant 0 : index
    %24 = vector.load %arg7[%c0_14, %c0_15] : memref<128x512xbf16, #tpu.memory_space<vmem>>, vector<128x512xbf16>
    %cst_16 = arith.constant dense<0.000000e+00> : vector<8x512xf32>
    %25 = tpu.matmul %23, %24, %cst_16 {dimension_numbers = #tpu.dot_dimension_numbers<[1], [0], [0], [1], [0, 0, 1, 1], [], []>} : vector<8x128xbf16>, vector<128x512xbf16>, vector<8x512xf32> -> vector<8x512xf32>
    %c0_17 = arith.constant 0 : index
    %c0_18 = arith.constant 0 : index
    %26 = vector.load %arg8[%c0_17, %c0_18] : memref<1x512xf32, #tpu.memory_space<vmem>>, vector<1x512xf32>
    %27 = vector.broadcast %26 : vector<1x512xf32> to vector<8x512xf32>
    %28 = arith.addf %25, %27 : vector<8x512xf32>
    %cst_19 = arith.constant 0.000000e+00 : f32
    %29 = vector.broadcast %cst_19 : f32 to vector<8x512xf32>
    %30 = arith.maximumf %28, %29 : vector<8x512xf32>
    %31 = arith.truncf %30 : vector<8x512xf32> to vector<8x512xbf16>
    %c0_20 = arith.constant 0 : index
    %c0_21 = arith.constant 0 : index
    %32 = vector.load %arg9[%c0_20, %c0_21] : memref<512x256xbf16, #tpu.memory_space<vmem>>, vector<512x256xbf16>
    %cst_22 = arith.constant dense<0.000000e+00> : vector<8x256xf32>
    %33 = tpu.matmul %31, %32, %cst_22 {dimension_numbers = #tpu.dot_dimension_numbers<[1], [0], [0], [1], [0, 0, 1, 1], [], []>} : vector<8x512xbf16>, vector<512x256xbf16>, vector<8x256xf32> -> vector<8x256xf32>
    %c0_23 = arith.constant 0 : index
    %c0_24 = arith.constant 0 : index
    %34 = vector.load %arg10[%c0_23, %c0_24] : memref<1x256xf32, #tpu.memory_space<vmem>>, vector<1x256xf32>
    %35 = vector.broadcast %34 : vector<1x256xf32> to vector<8x256xf32>
    %36 = arith.addf %33, %35 : vector<8x256xf32>
    %cst_25 = arith.constant 0.000000e+00 : f32
    %37 = vector.broadcast %cst_25 : f32 to vector<8x256xf32>
    %38 = arith.subf %37, %36 : vector<8x256xf32>
    %39 = math.exp %38 : vector<8x256xf32>
    %cst_26 = arith.constant 1.000000e+00 : f32
    %40 = vector.broadcast %cst_26 : f32 to vector<8x256xf32>
    %41 = arith.addf %40, %39 : vector<8x256xf32>
    %42 = tpu.reciprocal %41 : vector<8x256xf32> -> vector<8x256xf32>
    %c0_27 = arith.constant 0 : index
    %c0_28 = arith.constant 0 : index
    %43 = vector.load %arg11[%c0_27, %c0_28] : memref<8x256xf32, #tpu.memory_space<vmem>>, vector<8x256xf32>
    tpu.vector_store %arg11[%c0_27, %c0_28], %42 {strides = array<i32>} : memref<8x256xf32, #tpu.memory_space<vmem>>, vector<8x256xf32>,
    %c0_29 = arith.constant 0 : index
    %c0_30 = arith.constant 0 : index
    %44 = vector.load %arg12[%c0_29, %c0_30] : memref<8x256xf32, #tpu.memory_space<vmem>>, vector<8x256xf32>
    tpu.vector_store %arg12[%c0_29, %c0_30], %14 {strides = array<i32>} : memref<8x256xf32, #tpu.memory_space<vmem>>, vector<8x256xf32>,
    return
  }
  func.func @transform_0(%arg0: i32) -> (i32, i32) {
    %c0_i32 = arith.constant 0 : i32
    %c0_i32_0 = arith.constant 0 : i32
    return %arg0, %c0_i32 : i32, i32
  }
  func.func @transform_1(%arg0: i32) -> (i32, i32) {
    %c0_i32 = arith.constant 0 : i32
    %c0_i32_0 = arith.constant 0 : i32
    return %arg0, %c0_i32 : i32, i32
  }
  func.func @transform_2(%arg0: i32) -> (i32, i32) {
    %c0_i32 = arith.constant 0 : i32
    %c0_i32_0 = arith.constant 0 : i32
    %c0_i32_1 = arith.constant 0 : i32
    return %c0_i32, %c0_i32_0 : i32, i32
  }
  func.func @transform_3(%arg0: i32) -> (i32, i32) {
    %c0_i32 = arith.constant 0 : i32
    %c0_i32_0 = arith.constant 0 : i32
    %c0_i32_1 = arith.constant 0 : i32
    return %c0_i32, %c0_i32_0 : i32, i32
  }
  func.func @transform_4(%arg0: i32) -> (i32, i32) {
    %c0_i32 = arith.constant 0 : i32
    %c0_i32_0 = arith.constant 0 : i32
    %c0_i32_1 = arith.constant 0 : i32
    return %c0_i32, %c0_i32_0 : i32, i32
  }
  func.func @transform_5(%arg0: i32) -> (i32, i32) {
    %c0_i32 = arith.constant 0 : i32
    %c0_i32_0 = arith.constant 0 : i32
    %c0_i32_1 = arith.constant 0 : i32
    return %c0_i32, %c0_i32_0 : i32, i32
  }
  func.func @transform_6(%arg0: i32) -> (i32, i32) {
    %c0_i32 = arith.constant 0 : i32
    %c0_i32_0 = arith.constant 0 : i32
    %c0_i32_1 = arith.constant 0 : i32
    return %c0_i32, %c0_i32_0 : i32, i32
  }
  func.func @transform_7(%arg0: i32) -> (i32, i32) {
    %c0_i32 = arith.constant 0 : i32
    %c0_i32_0 = arith.constant 0 : i32
    %c0_i32_1 = arith.constant 0 : i32
    return %c0_i32, %c0_i32_0 : i32, i32
  }
  func.func @transform_8(%arg0: i32) -> (i32, i32) {
    %c0_i32 = arith.constant 0 : i32
    %c0_i32_0 = arith.constant 0 : i32
    %c0_i32_1 = arith.constant 0 : i32
    return %c0_i32, %c0_i32_0 : i32, i32
  }
  func.func @transform_9(%arg0: i32) -> (i32, i32) {
    %c0_i32 = arith.constant 0 : i32
    %c0_i32_0 = arith.constant 0 : i32
    %c0_i32_1 = arith.constant 0 : i32
    return %c0_i32, %c0_i32_0 : i32, i32
  }
  func.func @transform_10(%arg0: i32) -> (i32, i32) {
    %c0_i32 = arith.constant 0 : i32
    %c0_i32_0 = arith.constant 0 : i32
    return %arg0, %c0_i32 : i32, i32
  }
  func.func @transform_11(%arg0: i32) -> (i32, i32) {
    %c0_i32 = arith.constant 0 : i32
    %c0_i32_0 = arith.constant 0 : i32
    return %arg0, %c0_i32 : i32, i32
  }
}

</mosaic_0001>

<bundles_post_ra>
// kernel: tpu_custom_call.1
= control target key start
LH: loop header
LB: loop body
LE: loop exit
PB: predicated region body
PF: predicated region fallthrough
CT: control target
= control target key end

     0   :  { %17 = vsyncpa [#allocation3], 0  ;;  %s2860_s0 = inlined_call_operand.hbm [shape: f32[8,256], index: 0, kind: input, shape index: {}]   ;;  %s2861_s1 = inlined_call_operand.hbm [shape: f32[8,128], index: 1, kind: input, shape index: {}]   ;;  %s2862_s2 = inlined_call_operand.hbm [shape: bf16[256,512], index: 2, kind: input, shape index: {}]   ;;  %s2863_s3 = inlined_call_operand.vmem [shape: f32[1,512], index: 3, kind: input, shape index: {}]   ;;  %s2864_s4 = inlined_call_operand.hbm [shape: bf16[512,256], index: 4, kind: input, shape index: {}]   ;;  %s2865_s5 = inlined_call_operand.hbm [shape: f32[1,256], index: 5, kind: input, shape index: {}]   ;;  %s2866_s6 = inlined_call_operand.hbm [shape: bf16[128,512], index: 6, kind: input, shape index: {}]   ;;  %s2867_s7 = inlined_call_operand.vmem [shape: f32[1,512], index: 7, kind: input, shape index: {}]   ;;  %s2868_s8 = inlined_call_operand.hbm [shape: bf16[512,256], index: 8, kind: input, shape index: {}]   ;;  %s2869_s9 = inlined_call_operand.vmem [shape: f32[1,256], index: 9, kind: input, shape index: {}]   ;;  %s2870_s10 = inlined_call_operand.hbm [shape: f32[8,256], index: 10, kind: output, shape index: {0}]   ;;  %s2871_s11 = inlined_call_operand.hbm [shape: f32[8,256], index: 11, kind: output, shape index: {1}]  }
   0x1   :  { %18 = vsyncpa [#allocation6], 0 }
   0x2   :  { %19 = vsyncpa [#allocation9], 0 }
   0x3   :  { %20 = vsyncpa [#allocation12], 0 }
   0x4   :  { %21 = vsyncpa [#allocation4], 0 }
   0x5   :  { %22 = vsyncpa [#allocation16], 0  ;;  %s2718_s17 = smov [#allocation5]   ;;  %s2719_s19 = smov [#allocation8]  }
   0x6   :  { %s39_s18 = sshll.u32 %s2718_s17, 4  ;;  %s62_s20 = sshll.u32 %s2719_s19, 4  ;;  %s40_s18 = int_to_ptr.vmem [resolvable:$true] %s39_s18  ;;  %s63_s20 = int_to_ptr.vmem [resolvable:$true] %s62_s20 }
   0x7   :  { %s2534_s21 = scalar_lea.vmem %s40_s18, 128  ;;  %p2539_p1 = scmp.lt.s32.totalorder %s40_s18, %s40_s18 }
   0x8   :  { %p2535_p0 = scmp.ne.s32.totalorder %s40_s18, %s2534_s21  ;;  %p2540_p2 = scmp.lt.s32.totalorder %s2534_s21, %s2534_s21 }
   0xa   :  { %p2541_p3 = por %p2540_p2, %p2539_p1 }
   0xc   :  { %p2542_p4 = pnand %p2541_p3, %p2535_p0 }
   0xe   :  { %2545 = shalt.err (!%p2542_p4)
}
   0xf   :  { %42 = dma.hbm_to_vmem [thread:$0]  %s2861_s1, 128, %s40_s18, [#allocation6]  }
  0x10   :  { %s2554_s24 = scalar_lea.vmem %s63_s20, 8192  ;;  %p2559_p6 = scmp.lt.s32.totalorder %s63_s20, %s63_s20 }
  0x11   :  { %p2555_p5 = scmp.ne.s32.totalorder %s63_s20, %s2554_s24  ;;  %p2560_p7 = scmp.lt.s32.totalorder %s2554_s24, %s2554_s24 }
  0x13   :  { %p2561_p8 = por %p2560_p7, %p2559_p6 }
  0x15   :  { %p2562_p9 = pnand %p2561_p8, %p2555_p5 }
  0x17   :  { %2565 = shalt.err (!%p2562_p9)
}
  0x18   :  { %s2720_s25 = smov 128   ;;  %s2721_s26 = smov 8  }
  0x19   :  { %68 = dma.hbm_to_vmem [thread:$0]  %s2864_s4, 8192, %s63_s20, [#allocation9], %s2720_s25, %s2720_s25, %s2721_s26  }
  0x1a   :  { %s2722_s29 = smov [#allocation11]   ;;  %s2723_s12 = smov [#allocation2]  }
  0x1b   :  { %s84_s30 = sshll.u32 %s2722_s29, 4  ;;  %s29_s1 = sshll.u32 %s2723_s12, 4  ;;  %s85_s30 = int_to_ptr.vmem [resolvable:$true] %s84_s30  ;;  %s30_s1 = int_to_ptr.vmem [resolvable:$true] %s29_s1 }
  0x1c   :  { %s2574_s13 = scalar_lea.vmem %s85_s30, 4096  ;;  %p2579_p11 = scmp.lt.s32.totalorder %s85_s30, %s85_s30 }
  0x1d   :  { %p2575_p10 = scmp.ne.s32.totalorder %s85_s30, %s2574_s13  ;;  %p2580_p12 = scmp.lt.s32.totalorder %s2574_s13, %s2574_s13 }
  0x1f   :  { %p2581_p13 = por %p2580_p12, %p2579_p11 }
  0x21   :  { %p2582_p0 = pnand %p2581_p13, %p2575_p10 }
  0x23   :  { %2585 = shalt.err (!%p2582_p0)
}
  0x24   :  { %s2724_s14 = smov 256   ;;  %s2725_s15 = smov 16  }
  0x25   :  { %90 = dma.hbm_to_vmem [thread:$0]  %s2866_s6, 4096, %s85_s30, [#allocation12], %s2724_s14, %s2724_s14, %s2725_s15  }
  0x26   :  { %s2594_s4 = scalar_lea.vmem %s30_s1, 256  ;;  %p2599_p2 = scmp.lt.s32.totalorder %s30_s1, %s30_s1 }
  0x27   :  { %p2595_p1 = scmp.ne.s32.totalorder %s30_s1, %s2594_s4  ;;  %p2600_p3 = scmp.lt.s32.totalorder %s2594_s4, %s2594_s4 }
  0x29   :  { %p2601_p4 = por %p2600_p3, %p2599_p2 }
  0x2b   :  { %p2602_p5 = pnand %p2601_p4, %p2595_p1 }
  0x2d   :  { %2605 = shalt.err (!%p2602_p5)
}
  0x2e   :  { %32 = dma.hbm_to_vmem [thread:$0]  %s2860_s0, 256, %s30_s1, [#allocation3]  }
  0x2f   :  { %s2726_s20 = smov [#allocation7]   ;;  %s2727_s22 = smov [#allocation10]  }
  0x30   :  { %s48_s21 = sshll.u32 %s2726_s20, 4  ;;  %s75_s23 = sshll.u32 %s2727_s22, 4  ;;  %s49_s21 = int_to_ptr.vmem [resolvable:$true] %s48_s21  ;;  %s76_s23 = int_to_ptr.vmem [resolvable:$true] %s75_s23 }
  0x31   :  { %s2614_s24 = scalar_lea.vmem %s49_s21, 8192  ;;  %p2619_p7 = scmp.lt.s32.totalorder %s49_s21, %s49_s21 }
  0x32   :  { %p2615_p6 = scmp.ne.s32.totalorder %s49_s21, %s2614_s24  ;;  %p2620_p8 = scmp.lt.s32.totalorder %s2614_s24, %s2614_s24 }
  0x34   :  { %p2621_p9 = por %p2620_p8, %p2619_p7 }
  0x36   :  { %p2622_p10 = pnand %p2621_p9, %p2615_p6 }
  0x38   :  { %2625 = shalt.err (!%p2622_p10)
}
  0x39   :  { %54 = dma.hbm_to_vmem [thread:$0]  %s2862_s2, 8192, %s49_s21, [#allocation6], %s2724_s14, %s2724_s14, %s2725_s15  }
  0x3a   :  { %s2634_s28 = scalar_lea.vmem %s76_s23, 32  ;;  %p2639_p12 = scmp.lt.s32.totalorder %s76_s23, %s76_s23 }
  0x3b   :  { %p2635_p11 = scmp.ne.s32.totalorder %s76_s23, %s2634_s28  ;;  %p2640_p13 = scmp.lt.s32.totalorder %s2634_s28, %s2634_s28 }
  0x3d   :  { %p2641_p0 = por %p2640_p13, %p2639_p12 }
  0x3f   :  { %p2642_p1 = pnand %p2641_p0, %p2635_p11 }
  0x41   :  { %2645 = shalt.err (!%p2642_p1)
}
  0x42   :  { %78 = dma.hbm_to_vmem [thread:$0]  %s2865_s5, 32, %s76_s23, [#allocation9]  }
  0x43   :  { %s2728_s30 = smov [#allocation13]  }
  0x44   :  { %s98_s12 = sshll.u32 %s2728_s30, 4  ;;  %s99_s12 = int_to_ptr.vmem [resolvable:$true] %s98_s12 }
  0x45   :  { %s2654_s1 = scalar_lea.vmem %s99_s12, 8192  ;;  %p2659_p3 = scmp.lt.s32.totalorder %s99_s12, %s99_s12 }
  0x46   :  { %p2655_p2 = scmp.ne.s32.totalorder %s99_s12, %s2654_s1  ;;  %p2660_p4 = scmp.lt.s32.totalorder %s2654_s1, %s2654_s1 }
  0x48   :  { %p2661_p5 = por %p2660_p4, %p2659_p3 }
  0x4a   :  { %p2662_p6 = pnand %p2661_p5, %p2655_p2 }
  0x4c   :  { %2665 = shalt.err (!%p2662_p6)
}
  0x4d   :  { %104 = dma.hbm_to_vmem [thread:$0]  %s2868_s8, 8192, %s99_s12, [#allocation12], %s2720_s25, %s2720_s25, %s2721_s26  }
  0x4e   :  { %2706 = dma.done.wait [#allocation3], 256  }
  0x4f   :  { %2707 = vsyncadd [#allocation3], 4294967040 }
  0x50   :  { %2708 = dma.done.wait [#allocation6], 8320  }
  0x51   :  { %2709 = vsyncadd [#allocation6], 4294958976 }
  0x52   :  { %2710 = dma.done.wait [#allocation9], 8224  }
  0x53   :  { %2711 = vsyncadd [#allocation9], 4294959072 }
  0x54   :  { %2712 = dma.done.wait [#allocation12], 12288  }
  0x55   :  { %2713 = vsyncadd [#allocation12], 4294955008  ;;  %v2180_v0 = vld [vmem:[#allocation7 + $0xe4] ss:$16 sps:$4 sm:$0xff]   ;;  %v2182_v1 = vld [vmem:[#allocation7 + $0xec] ss:$16 sps:$4 sm:$0xff]  }
  0x56   :  { %539 = vmatprep.subr.bf16.mxu0 %v2180_v0  ;;  %v2184_v2 = vld [vmem:[#allocation7 + $0xe0] ss:$16 sps:$4 sm:$0xff]   ;;  %v2185_v3 = vld [vmem:[#allocation7 + $0xe8] ss:$16 sps:$4 sm:$0xff]   ;;  %580 = vmatprep.subr.bf16.mxu1 %v2182_v1  ;;  %v2186_v4 = vld [vmem:[#allocation7 + $0xc4] ss:$16 sps:$4 sm:$0xff]  }
  0x57   :  { %540 = vmatpush1.bf16.msra.mxu0 %v2184_v2  ;;  %581 = vmatpush1.bf16.msra.mxu1 %v2185_v3  ;;  %v2188_v5 = vld [vmem:[#allocation7 + $0xcc] ss:$16 sps:$4 sm:$0xff]   ;;  %v2190_v6 = vld [vmem:[#allocation7 + $0xc0] ss:$16 sps:$4 sm:$0xff]   ;;  %v2191_v7 = vld [vmem:[#allocation7 + $0xc8] ss:$16 sps:$4 sm:$0xff]  }
  0x58   :  { %541 = vmatprep.subr.bf16.mxu0 %v2186_v4  ;;  %582 = vmatprep.subr.bf16.mxu1 %v2188_v5  ;;  %v2192_v8 = vld [vmem:[#allocation7 + $0xa4] ss:$16 sps:$4 sm:$0xff]   ;;  %v2194_v9 = vld [vmem:[#allocation7 + $0xac] ss:$16 sps:$4 sm:$0xff]   ;;  %v2196_v10 = vld [vmem:[#allocation7 + $0xa0] ss:$16 sps:$4 sm:$0xff]  }
  0x59   :  { %v2197_v11 = vld [vmem:[#allocation7 + $0xa8] ss:$16 sps:$4 sm:$0xff]   ;;  %v2198_v12 = vld [vmem:[#allocation7 + $0x84] ss:$16 sps:$4 sm:$0xff]   ;;  %v2200_v13 = vld [vmem:[#allocation7 + $0x8c] ss:$16 sps:$4 sm:$0xff]  }
  0x5a   :  { %v2202_v14 = vld [vmem:[#allocation7 + $0x80] ss:$16 sps:$4 sm:$0xff]   ;;  %v2203_v15 = vld [vmem:[#allocation7 + $0x88] ss:$16 sps:$4 sm:$0xff]   ;;  %v2204_v16 = vld [vmem:[#allocation7 + $0x64] ss:$16 sps:$4 sm:$0xff]  }
  0x5b   :  { %542 = vmatpush1.bf16.msra.mxu0 %v2190_v6  ;;  %583 = vmatpush1.bf16.msra.mxu1 %v2191_v7  ;;  %v2206_v17 = vld [vmem:[#allocation7 + $0x6c] ss:$16 sps:$4 sm:$0xff]   ;;  %v2208_v18 = vld [vmem:[#allocation7 + $0x60] ss:$16 sps:$4 sm:$0xff]   ;;  %v2209_v19 = vld [vmem:[#allocation7 + $0x68] ss:$16 sps:$4 sm:$0xff]  }
  0x5c   :  { %543 = vmatprep.subr.bf16.mxu0 %v2192_v8  ;;  %584 = vmatprep.subr.bf16.mxu1 %v2194_v9  ;;  %v2210_v20 = vld [vmem:[#allocation7 + $0x44] ss:$16 sps:$4 sm:$0xff]   ;;  %v2212_v21 = vld [vmem:[#allocation7 + $0x4c] ss:$16 sps:$4 sm:$0xff]   ;;  %v2214_v22 = vld [vmem:[#allocation7 + $0x40] ss:$16 sps:$4 sm:$0xff]  }
  0x5d   :  { %v2215_v23 = vld [vmem:[#allocation7 + $0x48] ss:$16 sps:$4 sm:$0xff]   ;;  %v2216_v24 = vld [vmem:[#allocation7 + $0x24] ss:$16 sps:$4 sm:$0xff]   ;;  %v2218_v25 = vld [vmem:[#allocation7 + $0x2c] ss:$16 sps:$4 sm:$0xff]  }
  0x5e   :  { %v2220_v26 = vld [vmem:[#allocation7 + $0x20] ss:$16 sps:$4 sm:$0xff]   ;;  %v2221_v27 = vld [vmem:[#allocation7 + $0x28] ss:$16 sps:$4 sm:$0xff]   ;;  %v2222_v28 = vld [vmem:[#allocation7 + $0x4] ss:$16 sps:$4 sm:$0xff]  }
  0x5f   :  { %544 = vmatpush1.bf16.msra.mxu0 %v2196_v10  ;;  %585 = vmatpush1.bf16.msra.mxu1 %v2197_v11  ;;  %v2224_v29 = vld [vmem:[#allocation7 + $0xc] ss:$16 sps:$4 sm:$0xff]   ;;  %v2226_v30 = vld [vmem:[#allocation7] ss:$16 sps:$4 sm:$0xff]   ;;  %v2227_v31 = vld [vmem:[#allocation7 + $0x8] ss:$16 sps:$4 sm:$0xff]  }
  0x60   :  { %545 = vmatprep.subr.bf16.mxu0 %v2198_v12  ;;  %586 = vmatprep.subr.bf16.mxu1 %v2200_v13  ;;  %v2228_v32 = vld [vmem:[#allocation7 + $0x1e4] ss:$16 sps:$4 sm:$0xff]   ;;  %v2230_v33 = vld [vmem:[#allocation7 + $0x1ec] ss:$16 sps:$4 sm:$0xff]   ;;  %v2232_v34 = vld [vmem:[#allocation7 + $0x1e0] ss:$16 sps:$4 sm:$0xff]  }
  0x61   :  { %v2233_v35 = vld [vmem:[#allocation7 + $0x1e8] ss:$16 sps:$4 sm:$0xff]   ;;  %v2234_v36 = vld [vmem:[#allocation7 + $0x1c4] ss:$16 sps:$4 sm:$0xff]   ;;  %v2236_v37 = vld [vmem:[#allocation7 + $0x1cc] ss:$16 sps:$4 sm:$0xff]  }
  0x62   :  { %v2238_v38 = vld [vmem:[#allocation7 + $0x1c0] ss:$16 sps:$4 sm:$0xff]   ;;  %v2239_v39 = vld [vmem:[#allocation7 + $0x1c8] ss:$16 sps:$4 sm:$0xff]   ;;  %v2240_v40 = vld [vmem:[#allocation7 + $0x1a4] ss:$16 sps:$4 sm:$0xff]  }
  0x63   :  { %546 = vmatpush1.bf16.msra.mxu0 %v2202_v14  ;;  %587 = vmatpush1.bf16.msra.mxu1 %v2203_v15  ;;  %v2242_v41 = vld [vmem:[#allocation7 + $0x1ac] ss:$16 sps:$4 sm:$0xff]   ;;  %v2244_v42 = vld [vmem:[#allocation7 + $0x1a0] ss:$16 sps:$4 sm:$0xff]   ;;  %v2245_v43 = vld [vmem:[#allocation7 + $0x1a8] ss:$16 sps:$4 sm:$0xff]  }
  0x64   :  { %547 = vmatprep.subr.bf16.mxu0 %v2204_v16  ;;  %588 = vmatprep.subr.bf16.mxu1 %v2206_v17  ;;  %v2246_v44 = vld [vmem:[#allocation7 + $0x184] ss:$16 sps:$4 sm:$0xff]   ;;  %v2248_v45 = vld [vmem:[#allocation7 + $0x18c] ss:$16 sps:$4 sm:$0xff]   ;;  %v2250_v48 = vld [vmem:[#allocation7 + $0x180] ss:$16 sps:$4 sm:$0xff]  }
  0x65   :  { %v130_v46 = vld [vmem:[#allocation2 + $0x8] sm:$0xff]  ;;  %v2251_v49 = vld [vmem:[#allocation7 + $0x188] ss:$16 sps:$4 sm:$0xff]   ;;  %v2254_v51 = vld [vmem:[#allocation7 + $0x16c] ss:$16 sps:$4 sm:$0xff]  }
  0x66   :  { %v132_v47 = vpack.c.bf16 %v130_v46, %v130_v46  ;;  %v2252_v50 = vld [vmem:[#allocation7 + $0x164] ss:$16 sps:$4 sm:$0xff]   ;;  %v2256_v52 = vld [vmem:[#allocation7 + $0x160] ss:$16 sps:$4 sm:$0xff]   ;;  %v2257_v53 = vld [vmem:[#allocation7 + $0x168] ss:$16 sps:$4 sm:$0xff]  }
  0x67   :  { %548 = vmatpush1.bf16.msra.mxu0 %v2208_v18  ;;  %589 = vmatpush1.bf16.msra.mxu1 %v2209_v19  ;;  %v2258_v54 = vld [vmem:[#allocation7 + $0x144] ss:$16 sps:$4 sm:$0xff]   ;;  %v2260_v55 = vld [vmem:[#allocation7 + $0x14c] ss:$16 sps:$4 sm:$0xff]   ;;  %v2262_v56 = vld [vmem:[#allocation7 + $0x140] ss:$16 sps:$4 sm:$0xff]  }
  0x68   :  { %549 = vmatprep.subr.bf16.mxu0 %v2210_v20  ;;  %590 = vmatprep.subr.bf16.mxu1 %v2212_v21  ;;  %v2263_v57 = vld [vmem:[#allocation7 + $0x148] ss:$16 sps:$4 sm:$0xff]   ;;  %v2264_v58 = vld [vmem:[#allocation7 + $0x124] ss:$16 sps:$4 sm:$0xff]   ;;  %v2266_v59 = vld [vmem:[#allocation7 + $0x12c] ss:$16 sps:$4 sm:$0xff]  }
  0x69   :  { %571 = vmatprep.mubr.bf16.mxu0 %v132_v47  ;;  %612 = vmatprep.mubr.bf16.mxu1 %v132_v47  ;;  %v2268_v60 = vld [vmem:[#allocation7 + $0x120] ss:$16 sps:$4 sm:$0xff]   ;;  %v2269_v61 = vld [vmem:[#allocation7 + $0x128] ss:$16 sps:$4 sm:$0xff]   ;;  %v2270_v62 = vld [vmem:[#allocation7 + $0x104] ss:$16 sps:$4 sm:$0xff]  }
  0x6a   :  { %v2272_v63 = vld [vmem:[#allocation7 + $0x10c] ss:$16 sps:$4 sm:$0xff]   ;;  %v2274_v0 = vld [vmem:[#allocation7 + $0x100] ss:$16 sps:$4 sm:$0xff]   ;;  %v2275_v1 = vld [vmem:[#allocation7 + $0x108] ss:$16 sps:$4 sm:$0xff]  }
  0x6b   :  { %550 = vmatpush1.bf16.msra.mxu0 %v2214_v22  ;;  %591 = vmatpush1.bf16.msra.mxu1 %v2215_v23  ;;  %v129_v2 = vld [vmem:[#allocation2] sm:$0xff]  ;;  %v2278_v3 = vld [vmem:[#allocation8 + $0x74] ss:$8 sps:$4 sm:$0xff]   ;;  %v2276_v6 = vld [vmem:[#allocation8 + $0x70] ss:$8 sps:$4 sm:$0xff]  }
  0x6c   :  { %551 = vmatprep.subr.bf16.mxu0 %v2216_v24  ;;  %592 = vmatprep.subr.bf16.mxu1 %v2218_v25  ;;  %v2281_v4 = vld [vmem:[#allocation8 + $0x174] ss:$8 sps:$4 sm:$0xff]   ;;  %v131_v5 = vpack.c.bf16 %v129_v2, %v129_v2  ;;  %v2279_v7 = vld [vmem:[#allocation8 + $0x170] ss:$8 sps:$4 sm:$0xff]   ;;  %v2284_v8 = vld [vmem:[#allocation8 + $0x64] ss:$8 sps:$4 sm:$0xff]  }
  0x6d   :  { %v2287_v9 = vld [vmem:[#allocation8 + $0x164] ss:$8 sps:$4 sm:$0xff]   ;;  %v2282_v10 = vld [vmem:[#allocation8 + $0x60] ss:$8 sps:$4 sm:$0xff]   ;;  %v2290_v12 = vld [vmem:[#allocation8 + $0x54] ss:$8 sps:$4 sm:$0xff]  }
  0x6e   :  { %v2285_v11 = vld [vmem:[#allocation8 + $0x160] ss:$8 sps:$4 sm:$0xff]   ;;  %v2293_v13 = vld [vmem:[#allocation8 + $0x154] ss:$8 sps:$4 sm:$0xff]   ;;  %v2288_v14 = vld [vmem:[#allocation8 + $0x50] ss:$8 sps:$4 sm:$0xff]  }
  0x6f   :  { %552 = vmatpush1.bf16.msra.mxu0 %v2220_v26  ;;  %593 = vmatpush1.bf16.msra.mxu1 %v2221_v27  ;;  %v2291_v15 = vld [vmem:[#allocation8 + $0x150] ss:$8 sps:$4 sm:$0xff]   ;;  %v2296_v16 = vld [vmem:[#allocation8 + $0x44] ss:$8 sps:$4 sm:$0xff]   ;;  %v2294_v18 = vld [vmem:[#allocation8 + $0x40] ss:$8 sps:$4 sm:$0xff]  }
  0x70   :  { %553 = vmatprep.subr.bf16.mxu0 %v2222_v28  ;;  %594 = vmatprep.subr.bf16.mxu1 %v2224_v29  ;;  %v2299_v17 = vld [vmem:[#allocation8 + $0x144] ss:$8 sps:$4 sm:$0xff]   ;;  %v2297_v19 = vld [vmem:[#allocation8 + $0x140] ss:$8 sps:$4 sm:$0xff]   ;;  %v2302_v20 = vld [vmem:[#allocation8 + $0x34] ss:$8 sps:$4 sm:$0xff]  }
  0x71   :  { %v2305_v21 = vld [vmem:[#allocation8 + $0x134] ss:$8 sps:$4 sm:$0xff]   ;;  %v2300_v22 = vld [vmem:[#allocation8 + $0x30] ss:$8 sps:$4 sm:$0xff]   ;;  %v2308_v24 = vld [vmem:[#allocation8 + $0x24] ss:$8 sps:$4 sm:$0xff]  }
  0x72   :  { %v2303_v23 = vld [vmem:[#allocation8 + $0x130] ss:$8 sps:$4 sm:$0xff]   ;;  %v2311_v25 = vld [vmem:[#allocation8 + $0x124] ss:$8 sps:$4 sm:$0xff]   ;;  %v2306_v26 = vld [vmem:[#allocation8 + $0x20] ss:$8 sps:$4 sm:$0xff]  }
  0x73   :  { %554 = vmatpush1.bf16.msra.mxu0 %v2226_v30  ;;  %595 = vmatpush1.bf16.msra.mxu1 %v2227_v31  ;;  %v2309_v27 = vld [vmem:[#allocation8 + $0x120] ss:$8 sps:$4 sm:$0xff]   ;;  %v2314_v28 = vld [vmem:[#allocation8 + $0x14] ss:$8 sps:$4 sm:$0xff]   ;;  %v2312_v30 = vld [vmem:[#allocation8 + $0x10] ss:$8 sps:$4 sm:$0xff]  }
  0x74   :  { %555 = vmatprep.subr.bf16.mxu0 %v2228_v32  ;;  %596 = vmatprep.subr.bf16.mxu1 %v2230_v33  ;;  %v2317_v29 = vld [vmem:[#allocation8 + $0x114] ss:$8 sps:$4 sm:$0xff]   ;;  %v2315_v31 = vld [vmem:[#allocation8 + $0x110] ss:$8 sps:$4 sm:$0xff]   ;;  %v2320_v32 = vld [vmem:[#allocation8 + $0x4] ss:$8 sps:$4 sm:$0xff]  }
  0x75   :  { %v2323_v33 = vld [vmem:[#allocation8 + $0x104] ss:$8 sps:$4 sm:$0xff]   ;;  %v2336_v46 = vld [vmem:[#allocation8 + $0xd0] ss:$8 sps:$4 sm:$0xff]   ;;  %v2366_v2 = vld [vmem:[#allocation8 + $0x80] ss:$8 sps:$4 sm:$0xff]  }
  0x76   :  { %v2339_v47 = vld [vmem:[#allocation8 + $0x1d0] ss:$8 sps:$4 sm:$0xff]  }
  0x77   :  { %556 = vmatpush2.bf16.msra.mxu0 %v2232_v34  ;;  %597 = vmatpush2.bf16.msra.mxu1 %v2233_v35  ;;  %v2318_v34 = vld [vmem:[#allocation8] ss:$8 sps:$4 sm:$0xff]  }
  0x78   :  { %557 = vmatprep.subr.bf16.mxu0 %v2234_v36  ;;  %598 = vmatprep.subr.bf16.mxu1 %v2236_v37  ;;  %v2321_v35 = vld [vmem:[#allocation8 + $0x100] ss:$8 sps:$4 sm:$0xff]   ;;  %v2326_v36 = vld [vmem:[#allocation8 + $0xf4] ss:$8 sps:$4 sm:$0xff]  }
  0x79   :  { %v2329_v37 = vld [vmem:[#allocation8 + $0x1f4] ss:$8 sps:$4 sm:$0xff]  }
  0x7b   :  { %558 = vmatpush2.bf16.msra.mxu0 %v2238_v38  ;;  %599 = vmatpush2.bf16.msra.mxu1 %v2239_v39  ;;  %v2324_v38 = vld [vmem:[#allocation8 + $0xf0] ss:$8 sps:$4 sm:$0xff]  }
  0x7c   :  { %559 = vmatprep.subr.bf16.mxu0 %v2240_v40  ;;  %600 = vmatprep.subr.bf16.mxu1 %v2242_v41  ;;  %v2327_v39 = vld [vmem:[#allocation8 + $0x1f0] ss:$8 sps:$4 sm:$0xff]   ;;  %v2332_v40 = vld [vmem:[#allocation8 + $0xe4] ss:$8 sps:$4 sm:$0xff]  }
  0x7d   :  { %v2335_v41 = vld [vmem:[#allocation8 + $0x1e4] ss:$8 sps:$4 sm:$0xff]  }
  0x7f   :  { %560 = vmatpush2.bf16.msra.mxu0 %v2244_v42  ;;  %601 = vmatpush2.bf16.msra.mxu1 %v2245_v43  ;;  %v2330_v42 = vld [vmem:[#allocation8 + $0xe0] ss:$8 sps:$4 sm:$0xff]  }
  0x80   :  { %561 = vmatprep.subr.bf16.mxu0 %v2246_v44  ;;  %602 = vmatprep.subr.bf16.mxu1 %v2248_v45  ;;  %v2333_v43 = vld [vmem:[#allocation8 + $0x1e0] ss:$8 sps:$4 sm:$0xff]   ;;  %v2338_v44 = vld [vmem:[#allocation8 + $0xd4] ss:$8 sps:$4 sm:$0xff]  }
  0x81   :  { %v2341_v45 = vld [vmem:[#allocation8 + $0x1d4] ss:$8 sps:$4 sm:$0xff]  }
  0x83   :  { %562 = vmatpush2.bf16.msra.mxu0 %v2250_v48  ;;  %603 = vmatpush2.bf16.msra.mxu1 %v2251_v49  ;;  %v2344_v48 = vld [vmem:[#allocation8 + $0xc4] ss:$8 sps:$4 sm:$0xff]  }
  0x84   :  { %563 = vmatprep.subr.bf16.mxu0 %v2252_v50  ;;  %604 = vmatprep.subr.bf16.mxu1 %v2254_v51  ;;  %v2347_v49 = vld [vmem:[#allocation8 + $0x1c4] ss:$8 sps:$4 sm:$0xff]   ;;  %v2342_v50 = vld [vmem:[#allocation8 + $0xc0] ss:$8 sps:$4 sm:$0xff]  }
  0x85   :  { %v2345_v51 = vld [vmem:[#allocation8 + $0x1c0] ss:$8 sps:$4 sm:$0xff]  }
  0x87   :  { %564 = vmatpush2.bf16.msra.mxu0 %v2256_v52  ;;  %605 = vmatpush2.bf16.msra.mxu1 %v2257_v53  ;;  %v2350_v52 = vld [vmem:[#allocation8 + $0xb4] ss:$8 sps:$4 sm:$0xff]  }
  0x88   :  { %565 = vmatprep.subr.bf16.mxu0 %v2258_v54  ;;  %606 = vmatprep.subr.bf16.mxu1 %v2260_v55  ;;  %v2353_v53 = vld [vmem:[#allocation8 + $0x1b4] ss:$8 sps:$4 sm:$0xff]   ;;  %v2348_v54 = vld [vmem:[#allocation8 + $0xb0] ss:$8 sps:$4 sm:$0xff]  }
  0x89   :  { %v2351_v55 = vld [vmem:[#allocation8 + $0x1b0] ss:$8 sps:$4 sm:$0xff]  }
  0x8b   :  { %566 = vmatpush2.bf16.msra.mxu0 %v2262_v56  ;;  %607 = vmatpush2.bf16.msra.mxu1 %v2263_v57  ;;  %v2356_v56 = vld [vmem:[#allocation8 + $0xa4] ss:$8 sps:$4 sm:$0xff]  }
  0x8c   :  { %567 = vmatprep.subr.bf16.mxu0 %v2264_v58  ;;  %608 = vmatprep.subr.bf16.mxu1 %v2266_v59  ;;  %v2359_v57 = vld [vmem:[#allocation8 + $0x1a4] ss:$8 sps:$4 sm:$0xff]   ;;  %v2354_v58 = vld [vmem:[#allocation8 + $0xa0] ss:$8 sps:$4 sm:$0xff]  }
  0x8d   :  { %v2357_v59 = vld [vmem:[#allocation8 + $0x1a0] ss:$8 sps:$4 sm:$0xff]  }
  0x8f   :  { %568 = vmatpush2.bf16.msra.mxu0 %v2268_v60  ;;  %609 = vmatpush2.bf16.msra.mxu1 %v2269_v61  ;;  %v2362_v60 = vld [vmem:[#allocation8 + $0x94] ss:$8 sps:$4 sm:$0xff]  }
  0x90   :  { %569 = vmatprep.subr.bf16.mxu0 %v2270_v62  ;;  %610 = vmatprep.subr.bf16.mxu1 %v2272_v63  ;;  %v2365_v61 = vld [vmem:[#allocation8 + $0x194] ss:$8 sps:$4 sm:$0xff]   ;;  %v2360_v62 = vld [vmem:[#allocation8 + $0x90] ss:$8 sps:$4 sm:$0xff]  }
  0x91   :  { %v2363_v63 = vld [vmem:[#allocation8 + $0x190] ss:$8 sps:$4 sm:$0xff]  }
  0x93   :  { %570 = vmatpush2.bf16.msra.mxu0 %v2274_v0  ;;  %611 = vmatpush2.bf16.msra.mxu1 %v2275_v1  ;;  %v2368_v0 = vld [vmem:[#allocation8 + $0x84] ss:$8 sps:$4 sm:$0xff]  }
  0x94   :  { %1025 = vmatprep.subr.bf16.mxu0 %v2278_v3  ;;  %1066 = vmatprep.subr.bf16.mxu1 %v2281_v4  ;;  %v2371_v1 = vld [vmem:[#allocation8 + $0x184] ss:$8 sps:$4 sm:$0xff]   ;;  %v2369_v3 = vld [vmem:[#allocation8 + $0x180] ss:$8 sps:$4 sm:$0xff]  }
  0x95   :  { %v2374_v4 = vld [vmem:[#allocation11 + $0xe4] ss:$16 sps:$4 sm:$0xff]  }
  0x96   :  { %572 = vmatmul.mubr.bf16.vlgmr.msra.gmra.mxu0 %v131_v5  ;;  %613 = vmatmul.mubr.bf16.vlgmr.msra.gmra.mxu1 %v131_v5  ;;  %v2377_v5 = vld [vmem:[#allocation11 + $0xec] ss:$16 sps:$4 sm:$0xff]  }
  0x97   :  { %1026 = vmatpush1.bf16.msra.mxu0 %v2276_v6  ;;  %1067 = vmatpush1.bf16.msra.mxu1 %v2279_v7  ;;  %v199_v6 = vlaneseq }
  0x98   :  { %1027 = vmatprep.subr.bf16.mxu0 %v2284_v8  ;;  %1068 = vmatprep.subr.bf16.mxu1 %v2287_v9 }
  0x99   :  { %v2819_v7 = vshrl.u32 %v199_v6, 7  ;;  %v693_v6 = vld [vmem:[#allocation10] sm:$0x3] }
  0x9b   :  { %1028 = vmatpush1.bf16.msra.mxu0 %v2282_v10  ;;  %1069 = vmatpush1.bf16.msra.mxu1 %v2285_v11  ;;  %v2822_v8 = vsub.s32 0, %v2819_v7  ;;  %v209_v9 = vsub.s32 2, %v2819_v7  ;;  %v197_v10 = vld [vmem:[%s2863_s3] sm:$0xf]  ;;  %v2829_v11 = vsub.s32 1, %v2819_v7 }
  0x9c   :  { %1029 = vmatprep.subr.bf16.mxu0 %v2290_v12  ;;  %1070 = vmatprep.subr.bf16.mxu1 %v2293_v13  ;;  %v213_v12 = vsub.s32 3, %v2819_v7 }
  0x9d   :  { %v202_v13 = vrot.slane %v197_v10, %v2822_v8 }
  0x9f   :  { %1030 = vmatpush1.bf16.msra.mxu0 %v2288_v14  ;;  %1071 = vmatpush1.bf16.msra.mxu1 %v2291_v15  ;;  %v210_v14 = vrot.slane %v197_v10, %v209_v9  ;;  %v206_v15 = vrot.slane %v197_v10, %v2829_v11 }
  0xa0   :  { %1031 = vmatprep.subr.bf16.mxu0 %v2296_v16  ;;  %1072 = vmatprep.subr.bf16.mxu1 %v2299_v17  ;;  %v214_v16 = vrot.slane %v197_v10, %v213_v12  ;;  %v698_v10 = vrot.slane %v693_v6, %v2822_v8 }
  0xa3   :  { %1032 = vmatpush1.bf16.msra.mxu0 %v2294_v18  ;;  %1073 = vmatpush1.bf16.msra.mxu1 %v2297_v19 }
  0xa4   :  { %1033 = vmatprep.subr.bf16.mxu0 %v2302_v20  ;;  %1074 = vmatprep.subr.bf16.mxu1 %v2305_v21 }
  0xa7   :  { %1034 = vmatpush1.bf16.msra.mxu0 %v2300_v22  ;;  %1075 = vmatpush1.bf16.msra.mxu1 %v2303_v23 }
  0xa8   :  { %1035 = vmatprep.subr.bf16.mxu0 %v2308_v24  ;;  %1076 = vmatprep.subr.bf16.mxu1 %v2311_v25 }
  0xab   :  { %1036 = vmatpush1.bf16.msra.mxu0 %v2306_v26  ;;  %1077 = vmatpush1.bf16.msra.mxu1 %v2309_v27 }
  0xac   :  { %1037 = vmatprep.subr.bf16.mxu0 %v2314_v28  ;;  %1078 = vmatprep.subr.bf16.mxu1 %v2317_v29 }
  0xaf   :  { %1038 = vmatpush1.bf16.msra.mxu0 %v2312_v30  ;;  %1079 = vmatpush1.bf16.msra.mxu1 %v2315_v31 }
  0xb0   :  { %1039 = vmatprep.subr.bf16.mxu0 %v2320_v32  ;;  %1080 = vmatprep.subr.bf16.mxu1 %v2323_v33 }
  0xb3   :  { %1040 = vmatpush1.bf16.msra.mxu0 %v2318_v34  ;;  %1081 = vmatpush1.bf16.msra.mxu1 %v2321_v35 }
  0xb4   :  { %1041 = vmatprep.subr.bf16.mxu0 %v2326_v36  ;;  %1082 = vmatprep.subr.bf16.mxu1 %v2329_v37  ;;  %v2372_v36 = vld [vmem:[#allocation11 + $0xe0] ss:$16 sps:$4 sm:$0xff]   ;;  %v2375_v37 = vld [vmem:[#allocation11 + $0xe8] ss:$16 sps:$4 sm:$0xff]  }
  0xb7   :  { %1042 = vmatpush2.bf16.msra.mxu0 %v2324_v38  ;;  %1083 = vmatpush2.bf16.msra.mxu1 %v2327_v39  ;;  %v2380_v39 = vld [vmem:[#allocation11 + $0xc4] ss:$16 sps:$4 sm:$0xff]  }
  0xb8   :  { %1043 = vmatprep.subr.bf16.mxu0 %v2332_v40  ;;  %1084 = vmatprep.subr.bf16.mxu1 %v2335_v41  ;;  %v2383_v40 = vld [vmem:[#allocation11 + $0xcc] ss:$16 sps:$4 sm:$0xff]   ;;  %v2378_v41 = vld [vmem:[#allocation11 + $0xc0] ss:$16 sps:$4 sm:$0xff]  }
  0xbb   :  { %1044 = vmatpush2.bf16.msra.mxu0 %v2330_v42  ;;  %1085 = vmatpush2.bf16.msra.mxu1 %v2333_v43  ;;  %v2381_v42 = vld [vmem:[#allocation11 + $0xc8] ss:$16 sps:$4 sm:$0xff]   ;;  %v2386_v43 = vld [vmem:[#allocation11 + $0xa4] ss:$16 sps:$4 sm:$0xff]  }
  0xbc   :  { %1045 = vmatprep.subr.bf16.mxu0 %v2338_v44  ;;  %1086 = vmatprep.subr.bf16.mxu1 %v2341_v45  ;;  %v2389_v44 = vld [vmem:[#allocation11 + $0xac] ss:$16 sps:$4 sm:$0xff]   ;;  %v2384_v45 = vld [vmem:[#allocation11 + $0xa0] ss:$16 sps:$4 sm:$0xff]  }
  0xbf   :  { %1046 = vmatpush2.bf16.msra.mxu0 %v2336_v46  ;;  %1087 = vmatpush2.bf16.msra.mxu1 %v2339_v47  ;;  %v2387_v46 = vld [vmem:[#allocation11 + $0xa8] ss:$16 sps:$4 sm:$0xff]   ;;  %v2392_v47 = vld [vmem:[#allocation11 + $0x84] ss:$16 sps:$4 sm:$0xff]  }
  0xc0   :  { %1047 = vmatprep.subr.bf16.mxu0 %v2344_v48  ;;  %1088 = vmatprep.subr.bf16.mxu1 %v2347_v49  ;;  %v2395_v48 = vld [vmem:[#allocation11 + $0x8c] ss:$16 sps:$4 sm:$0xff]   ;;  %v2390_v49 = vld [vmem:[#allocation11 + $0x80] ss:$16 sps:$4 sm:$0xff]  }
  0xc3   :  { %1048 = vmatpush2.bf16.msra.mxu0 %v2342_v50  ;;  %1089 = vmatpush2.bf16.msra.mxu1 %v2345_v51  ;;  %v2393_v50 = vld [vmem:[#allocation11 + $0x88] ss:$16 sps:$4 sm:$0xff]   ;;  %v2398_v51 = vld [vmem:[#allocation11 + $0x64] ss:$16 sps:$4 sm:$0xff]  }
  0xc4   :  { %1049 = vmatprep.subr.bf16.mxu0 %v2350_v52  ;;  %1090 = vmatprep.subr.bf16.mxu1 %v2353_v53  ;;  %v2396_v52 = vld [vmem:[#allocation11 + $0x60] ss:$16 sps:$4 sm:$0xff]   ;;  %v2399_v53 = vld [vmem:[#allocation11 + $0x68] ss:$16 sps:$4 sm:$0xff]  }
  0xc7   :  { %1050 = vmatpush2.bf16.msra.mxu0 %v2348_v54  ;;  %1091 = vmatpush2.bf16.msra.mxu1 %v2351_v55  ;;  %v2401_v54 = vld [vmem:[#allocation11 + $0x6c] ss:$16 sps:$4 sm:$0xff]   ;;  %v2404_v55 = vld [vmem:[#allocation11 + $0x44] ss:$16 sps:$4 sm:$0xff]  }
  0xc8   :  { %1051 = vmatprep.subr.bf16.mxu0 %v2356_v56  ;;  %1092 = vmatprep.subr.bf16.mxu1 %v2359_v57  ;;  %v2407_v56 = vld [vmem:[#allocation11 + $0x4c] ss:$16 sps:$4 sm:$0xff]   ;;  %v2402_v57 = vld [vmem:[#allocation11 + $0x40] ss:$16 sps:$4 sm:$0xff]  }
  0xcb   :  { %1052 = vmatpush2.bf16.msra.mxu0 %v2354_v58  ;;  %1093 = vmatpush2.bf16.msra.mxu1 %v2357_v59  ;;  %v2405_v58 = vld [vmem:[#allocation11 + $0x48] ss:$16 sps:$4 sm:$0xff]   ;;  %v2410_v59 = vld [vmem:[#allocation11 + $0x24] ss:$16 sps:$4 sm:$0xff]  }
  0xcc   :  { %1053 = vmatprep.subr.bf16.mxu0 %v2362_v60  ;;  %1094 = vmatprep.subr.bf16.mxu1 %v2365_v61  ;;  %v2413_v60 = vld [vmem:[#allocation11 + $0x2c] ss:$16 sps:$4 sm:$0xff]   ;;  %v2729_v61 = vmov 0  }
  0xcf   :  { %1054 = vmatpush2.bf16.msra.mxu0 %v2360_v62  ;;  %1095 = vmatpush2.bf16.msra.mxu1 %v2363_v63  ;;  %v2408_v62 = vld [vmem:[#allocation11 + $0x20] ss:$16 sps:$4 sm:$0xff]   ;;  %v2411_v63 = vld [vmem:[#allocation11 + $0x28] ss:$16 sps:$4 sm:$0xff]  }
  0xd0   :  { %1055 = vmatprep.subr.bf16.mxu0 %v2368_v0  ;;  %1096 = vmatprep.subr.bf16.mxu1 %v2371_v1  ;;  %v2416_v0 = vld [vmem:[#allocation11 + $0x4] ss:$16 sps:$4 sm:$0xff]   ;;  %v2419_v1 = vld [vmem:[#allocation11 + $0xc] ss:$16 sps:$4 sm:$0xff]  }
  0xd3   :  { %1056 = vmatpush2.bf16.msra.mxu0 %v2366_v2  ;;  %1097 = vmatpush2.bf16.msra.mxu1 %v2369_v3  ;;  %v2414_v2 = vld [vmem:[#allocation11] ss:$16 sps:$4 sm:$0xff]   ;;  %v2417_v3 = vld [vmem:[#allocation11 + $0x8] ss:$16 sps:$4 sm:$0xff]  }
  0xd4   :  { %1328 = vmatprep.subr.bf16.mxu0 %v2374_v4  ;;  %1369 = vmatprep.subr.bf16.mxu1 %v2377_v5  ;;  %v2422_v4 = vld [vmem:[#allocation13 + $0x74] ss:$8 sps:$4 sm:$0xff]  }
  0xd5   :  { %v2425_v5 = vld [vmem:[#allocation13 + $0x174] ss:$8 sps:$4 sm:$0xff]  }
 0x156   :  { %v573_v17 = vpop.f32.mrf.mxu0  ;;  %v614_v18 = vpop.f32.mrf.mxu1 }
 0x157   :  { %v574_v19 = vadd.f32 %v573_v17, %v202_v13  ;;  %v615_v20 = vadd.f32 %v614_v18, %v210_v14  ;;  %v702_v13 = vrot.slane %v693_v6, %v2829_v11  ;;  %v2477_v6 = vld [vmem:[#allocation13 + $0x1e0] ss:$8 sps:$4 sm:$0xff]  }
 0x158   :  { %v575_v21 = vpop.f32.mrf.mxu0  ;;  %v616_v22 = vpop.f32.mrf.mxu1 }
 0x159   :  { %v623_v23 = vmax.f32 %v615_v20, 0.0  ;;  %v576_v24 = vadd.f32 %v575_v21, %v206_v15  ;;  %v617_v25 = vadd.f32 %v616_v22, %v214_v16  ;;  %v621_v26 = vmax.f32 %v574_v19, 0.0 }
 0x15a   :  { %v577_v27 = vpop.f32.mrf.mxu0  ;;  %v618_v28 = vpop.f32.mrf.mxu1 }
 0x15b   :  { %v622_v29 = vmax.f32 %v576_v24, 0.0  ;;  %v624_v30 = vmax.f32 %v617_v25, 0.0  ;;  %v627_v31 = vpack.c.bf16 %v623_v23, %v623_v23  ;;  %v625_v38 = vpack.c.bf16 %v621_v26, %v621_v26  ;;  %v1107_v28 = vld [vmem:[#allocation5] sm:$0xff] }
 0x15c   :  { %v578_v32 = vpop.f32.mrf.mxu0  ;;  %v619_v33 = vpop.f32.mrf.mxu1 }
 0x15d   :  { %v626_v34 = vpack.c.bf16 %v622_v29, %v622_v29  ;;  %v628_v35 = vpack.c.bf16 %v624_v30, %v624_v30  ;;  %v2420_v32 = vld [vmem:[#allocation13 + $0x70] ss:$8 sps:$4 sm:$0xff]  }
 0x15e   :  { %v2423_v33 = vld [vmem:[#allocation13 + $0x170] ss:$8 sps:$4 sm:$0xff]  }
 0x15f   :  { %1057 = vmatprep.mubr.bf16.mxu0 %v626_v34  ;;  %1098 = vmatprep.mubr.bf16.mxu1 %v628_v35  ;;  %v2428_v35 = vld [vmem:[#allocation13 + $0x64] ss:$8 sps:$4 sm:$0xff]  }
 0x160   :  { %1058 = vmatmul.mubr.bf16.vlgmr.msra.gmra.mxu0 %v625_v38  ;;  %1099 = vmatmul.mubr.bf16.vlgmr.msra.gmra.mxu1 %v627_v31  ;;  %v2429_v38 = vld [vmem:[#allocation13 + $0x160] ss:$8 sps:$4 sm:$0xff]  }
 0x161   :  { %1329 = vmatpush1.bf16.msra.mxu0 %v2372_v36  ;;  %1370 = vmatpush1.bf16.msra.mxu1 %v2375_v37  ;;  %v2431_v36 = vld [vmem:[#allocation13 + $0x164] ss:$8 sps:$4 sm:$0xff]   ;;  %v2426_v37 = vld [vmem:[#allocation13 + $0x60] ss:$8 sps:$4 sm:$0xff]  }
 0x162   :  { %1330 = vmatprep.subr.bf16.mxu0 %v2380_v39  ;;  %1371 = vmatprep.subr.bf16.mxu1 %v2383_v40  ;;  %v2434_v39 = vld [vmem:[#allocation13 + $0x54] ss:$8 sps:$4 sm:$0xff]  }
 0x163   :  { %1360 = vmatprep.mubr.bf16.mxu0 %v2729_v61  ;;  %1401 = vmatprep.mubr.bf16.mxu1 %v2729_v61  ;;  %v2437_v40 = vld [vmem:[#allocation13 + $0x154] ss:$8 sps:$4 sm:$0xff]   ;;  %v2462_v61 = vld [vmem:[#allocation13] ss:$8 sps:$4 sm:$0xff]  }
 0x165   :  { %1331 = vmatpush1.bf16.msra.mxu0 %v2378_v41  ;;  %1372 = vmatpush1.bf16.msra.mxu1 %v2381_v42  ;;  %v2432_v41 = vld [vmem:[#allocation13 + $0x50] ss:$8 sps:$4 sm:$0xff]  }
 0x166   :  { %1332 = vmatprep.subr.bf16.mxu0 %v2386_v43  ;;  %1373 = vmatprep.subr.bf16.mxu1 %v2389_v44  ;;  %v2435_v42 = vld [vmem:[#allocation13 + $0x150] ss:$8 sps:$4 sm:$0xff]   ;;  %v2440_v43 = vld [vmem:[#allocation13 + $0x44] ss:$8 sps:$4 sm:$0xff]  }
 0x167   :  { %v2443_v44 = vld [vmem:[#allocation13 + $0x144] ss:$8 sps:$4 sm:$0xff]  }
 0x169   :  { %1333 = vmatpush1.bf16.msra.mxu0 %v2384_v45  ;;  %1374 = vmatpush1.bf16.msra.mxu1 %v2387_v46  ;;  %v2438_v45 = vld [vmem:[#allocation13 + $0x40] ss:$8 sps:$4 sm:$0xff]  }
 0x16a   :  { %1334 = vmatprep.subr.bf16.mxu0 %v2392_v47  ;;  %1375 = vmatprep.subr.bf16.mxu1 %v2395_v48  ;;  %v2441_v46 = vld [vmem:[#allocation13 + $0x140] ss:$8 sps:$4 sm:$0xff]   ;;  %v2446_v47 = vld [vmem:[#allocation13 + $0x34] ss:$8 sps:$4 sm:$0xff]  }
 0x16b   :  { %v2449_v48 = vld [vmem:[#allocation13 + $0x134] ss:$8 sps:$4 sm:$0xff]  }
 0x16d   :  { %1335 = vmatpush1.bf16.msra.mxu0 %v2390_v49  ;;  %1376 = vmatpush1.bf16.msra.mxu1 %v2393_v50  ;;  %v2444_v49 = vld [vmem:[#allocation13 + $0x30] ss:$8 sps:$4 sm:$0xff]  }
 0x16e   :  { %1336 = vmatprep.subr.bf16.mxu0 %v2398_v51  ;;  %1377 = vmatprep.subr.bf16.mxu1 %v2401_v54  ;;  %v2447_v50 = vld [vmem:[#allocation13 + $0x130] ss:$8 sps:$4 sm:$0xff]   ;;  %v2452_v51 = vld [vmem:[#allocation13 + $0x24] ss:$8 sps:$4 sm:$0xff]   ;;  %v2453_v54 = vld [vmem:[#allocation13 + $0x120] ss:$8 sps:$4 sm:$0xff]  }
 0x171   :  { %1337 = vmatpush1.bf16.msra.mxu0 %v2396_v52  ;;  %1378 = vmatpush1.bf16.msra.mxu1 %v2399_v53  ;;  %v2455_v52 = vld [vmem:[#allocation13 + $0x124] ss:$8 sps:$4 sm:$0xff]   ;;  %v2450_v53 = vld [vmem:[#allocation13 + $0x20] ss:$8 sps:$4 sm:$0xff]  }
 0x172   :  { %1338 = vmatprep.subr.bf16.mxu0 %v2404_v55  ;;  %1379 = vmatprep.subr.bf16.mxu1 %v2407_v56  ;;  %v2458_v55 = vld [vmem:[#allocation13 + $0x14] ss:$8 sps:$4 sm:$0xff]  }
 0x173   :  { %v2461_v56 = vld [vmem:[#allocation13 + $0x114] ss:$8 sps:$4 sm:$0xff]  }
 0x175   :  { %1339 = vmatpush1.bf16.msra.mxu0 %v2402_v57  ;;  %1380 = vmatpush1.bf16.msra.mxu1 %v2405_v58  ;;  %v2456_v57 = vld [vmem:[#allocation13 + $0x10] ss:$8 sps:$4 sm:$0xff]  }
 0x176   :  { %1340 = vmatprep.subr.bf16.mxu0 %v2410_v59  ;;  %1381 = vmatprep.subr.bf16.mxu1 %v2413_v60  ;;  %v2459_v58 = vld [vmem:[#allocation13 + $0x110] ss:$8 sps:$4 sm:$0xff]   ;;  %v2464_v59 = vld [vmem:[#allocation13 + $0x4] ss:$8 sps:$4 sm:$0xff]  }
 0x177   :  { %v2467_v60 = vld [vmem:[#allocation13 + $0x104] ss:$8 sps:$4 sm:$0xff]  }
 0x179   :  { %1341 = vmatpush1.bf16.msra.mxu0 %v2408_v62  ;;  %1382 = vmatpush1.bf16.msra.mxu1 %v2411_v63  ;;  %v2465_v62 = vld [vmem:[#allocation13 + $0x100] ss:$8 sps:$4 sm:$0xff]   ;;  %v2470_v63 = vld [vmem:[#allocation13 + $0xf4] ss:$8 sps:$4 sm:$0xff]  }
 0x17a   :  { %1342 = vmatprep.subr.bf16.mxu0 %v2416_v0  ;;  %1383 = vmatprep.subr.bf16.mxu1 %v2419_v1  ;;  %v2473_v0 = vld [vmem:[#allocation13 + $0x1f4] ss:$8 sps:$4 sm:$0xff]   ;;  %v2468_v1 = vld [vmem:[#allocation13 + $0xf0] ss:$8 sps:$4 sm:$0xff]  }
 0x17d   :  { %1343 = vmatpush1.bf16.msra.mxu0 %v2414_v2  ;;  %1384 = vmatpush1.bf16.msra.mxu1 %v2417_v3  ;;  %v2471_v2 = vld [vmem:[#allocation13 + $0x1f0] ss:$8 sps:$4 sm:$0xff]   ;;  %v2476_v3 = vld [vmem:[#allocation13 + $0xe4] ss:$8 sps:$4 sm:$0xff]  }
 0x17e   :  { %1814 = vmatprep.subr.bf16.mxu0 %v2422_v4  ;;  %1855 = vmatprep.subr.bf16.mxu1 %v2425_v5  ;;  %v2479_v4 = vld [vmem:[#allocation13 + $0x1e4] ss:$8 sps:$4 sm:$0xff]   ;;  %v2474_v5 = vld [vmem:[#allocation13 + $0xe0] ss:$8 sps:$4 sm:$0xff]  }
 0x220   :  { %v1059_v14 = vpop.f32.mrf.mxu0  ;;  %v1100_v15 = vpop.f32.mrf.mxu1 }
 0x221   :  { %v1060_v16 = vadd.f32 %v1059_v14, %v698_v10  ;;  %v2482_v10 = vld [vmem:[#allocation13 + $0xd4] ss:$8 sps:$4 sm:$0xff]   ;;  %v2480_v14 = vld [vmem:[#allocation13 + $0xd0] ss:$8 sps:$4 sm:$0xff]  }
 0x222   :  { %v1061_v17 = vpop.f32.mrf.mxu0  ;;  %v1102_v18 = vpop.f32.mrf.mxu1 }
 0x223   :  { %v1101_v19 = vadd.f32 %v1100_v15, %v1060_v16  ;;  %v1062_v20 = vadd.f32 %v1061_v17, %v702_v13  ;;  %v2485_v13 = vld [vmem:[#allocation13 + $0x1d4] ss:$8 sps:$4 sm:$0xff]   ;;  %v2483_v15 = vld [vmem:[#allocation13 + $0x1d0] ss:$8 sps:$4 sm:$0xff]   ;;  %v2488_v16 = vld [vmem:[#allocation13 + $0xc4] ss:$8 sps:$4 sm:$0xff]  }
 0x224   :  { %v1063_v21 = vpop.f32.mrf.mxu0  ;;  %v1104_v22 = vpop.f32.mrf.mxu1  ;;  %v2491_v17 = vld [vmem:[#allocation13 + $0x1c4] ss:$8 sps:$4 sm:$0xff]  }
 0x225   :  { %1908 = vst [vmem:[#allocation15] sm:$0xff] %v1101_v19  ;;  %v1103_v23 = vadd.f32 %v1102_v18, %v1062_v20  ;;  %v2486_v18 = vld [vmem:[#allocation13 + $0xc0] ss:$8 sps:$4 sm:$0xff]   ;;  %v2494_v20 = vld [vmem:[#allocation13 + $0xb4] ss:$8 sps:$4 sm:$0xff]  }
 0x226   :  { %v1064_v24 = vpop.f32.mrf.mxu0  ;;  %v1105_v25 = vpop.f32.mrf.mxu1  ;;  %v2497_v21 = vld [vmem:[#allocation13 + $0x1b4] ss:$8 sps:$4 sm:$0xff]   ;;  %v2492_v22 = vld [vmem:[#allocation13 + $0xb0] ss:$8 sps:$4 sm:$0xff]  }
 0x227   :  { %v1108_v26 = vmul.f32 0.5, %v1103_v23  ;;  %1909 = vst [vmem:[#allocation15 + $0x8] sm:$0xff] %v1103_v23  ;;  %v2495_v23 = vld [vmem:[#allocation13 + $0x1b0] ss:$8 sps:$4 sm:$0xff]   ;;  %v2500_v24 = vld [vmem:[#allocation13 + $0xa4] ss:$8 sps:$4 sm:$0xff]  }
 0x228   :  { %v2503_v25 = vld [vmem:[#allocation13 + $0x1a4] ss:$8 sps:$4 sm:$0xff]  }
 0x229   :  { %v1109_v27 = vmul.f32 1.442695, %v1108_v26  ;;  %v2498_v26 = vld [vmem:[#allocation13 + $0xa0] ss:$8 sps:$4 sm:$0xff]  }
 0x22b   :  { %2516 = vpow2.f32 %v1109_v27  ;;  %v2501_v27 = vld [vmem:[#allocation13 + $0x1a0] ss:$8 sps:$4 sm:$0xff]  }
 0x238   :  { %v2517_v29 = vpop.eup %2516 }
 0x239   :  { %v1111_v30 = vmul.f32 %v2517_v29, %v1107_v28  ;;  %v2506_v28 = vld [vmem:[#allocation13 + $0x94] ss:$8 sps:$4 sm:$0xff]  }
 0x23a   :  { %v2509_v29 = vld [vmem:[#allocation13 + $0x194] ss:$8 sps:$4 sm:$0xff]  }
 0x23b   :  { %v1112_v31 = vadd.f32 %v1111_v30, %v1101_v19  ;;  %v2489_v19 = vld [vmem:[#allocation13 + $0x1c0] ss:$8 sps:$4 sm:$0xff]   ;;  %v2504_v30 = vld [vmem:[#allocation13 + $0x90] ss:$8 sps:$4 sm:$0xff]  }
 0x23d   :  { %v1113_v34 = vpack.c.bf16 %v1112_v31, %v1112_v31  ;;  %v2507_v31 = vld [vmem:[#allocation13 + $0x190] ss:$8 sps:$4 sm:$0xff]  }
 0x23f   :  { %1361 = vmatmul.mubr.bf16.vlgmr.msra.gmra.mxu0 %v1113_v34  ;;  %1402 = vmatmul.mubr.bf16.vlgmr.msra.gmra.mxu1 %v1113_v34  ;;  %v2510_v34 = vld [vmem:[#allocation13 + $0x80] ss:$8 sps:$4 sm:$0xff]  }
 0x240   :  { %1815 = vmatpush1.bf16.msra.mxu0 %v2420_v32  ;;  %1856 = vmatpush1.bf16.msra.mxu1 %v2423_v33  ;;  %v2512_v32 = vld [vmem:[#allocation13 + $0x84] ss:$8 sps:$4 sm:$0xff]  }
 0x241   :  { %1816 = vmatprep.subr.bf16.mxu0 %v2428_v35  ;;  %1857 = vmatprep.subr.bf16.mxu1 %v2431_v36  ;;  %v2515_v33 = vld [vmem:[#allocation13 + $0x184] ss:$8 sps:$4 sm:$0xff]   ;;  %v2513_v35 = vld [vmem:[#allocation13 + $0x180] ss:$8 sps:$4 sm:$0xff]  }
 0x242   :  { %v1146_v36 = vld [vmem:[%s2867_s7] sm:$0xf]  ;;  %s2730_s7 = smov [#allocation15]  }
 0x243   :  { %s1926_s26 = sshll.u32 %s2730_s7, 4  ;;  %s1927_s26 = int_to_ptr.vmem [resolvable:$true] %s1926_s26 }
 0x244   :  { %1817 = vmatpush1.bf16.msra.mxu0 %v2426_v37  ;;  %1858 = vmatpush1.bf16.msra.mxu1 %v2429_v38  ;;  %v1151_v37 = vrot.slane %v1146_v36, %v2822_v8  ;;  %v1159_v38 = vrot.slane %v1146_v36, %v209_v9  ;;  %s2666_s14 = scalar_lea.vmem %s1927_s26, 256  ;;  %p2671_p8 = scmp.lt.s32.totalorder %s1927_s26, %s1927_s26 }
 0x245   :  { %1818 = vmatprep.subr.bf16.mxu0 %v2434_v39  ;;  %1859 = vmatprep.subr.bf16.mxu1 %v2437_v40  ;;  %v1155_v39 = vrot.slane %v1146_v36, %v2829_v11  ;;  %v1163_v40 = vrot.slane %v1146_v36, %v213_v12  ;;  %p2667_p7 = scmp.ne.s32.totalorder %s1927_s26, %s2666_s14  ;;  %p2672_p9 = scmp.lt.s32.totalorder %s2666_s14, %s2666_s14 }
 0x247   :  { %p2673_p10 = por %p2672_p9, %p2671_p8 }
 0x248   :  { %1819 = vmatpush1.bf16.msra.mxu0 %v2432_v41  ;;  %1860 = vmatpush1.bf16.msra.mxu1 %v2435_v42 }
 0x249   :  { %1820 = vmatprep.subr.bf16.mxu0 %v2440_v43  ;;  %1861 = vmatprep.subr.bf16.mxu1 %v2443_v44  ;;  %p2674_p11 = pnand %p2673_p10, %p2667_p7 }
 0x24c   :  { %1821 = vmatpush1.bf16.msra.mxu0 %v2438_v45  ;;  %1862 = vmatpush1.bf16.msra.mxu1 %v2441_v46 }
 0x24d   :  { %1822 = vmatprep.subr.bf16.mxu0 %v2446_v47  ;;  %1863 = vmatprep.subr.bf16.mxu1 %v2449_v48 }
 0x250   :  { %1823 = vmatpush1.bf16.msra.mxu0 %v2444_v49  ;;  %1864 = vmatpush1.bf16.msra.mxu1 %v2447_v50 }
 0x251   :  { %1824 = vmatprep.subr.bf16.mxu0 %v2452_v51  ;;  %1865 = vmatprep.subr.bf16.mxu1 %v2455_v52 }
 0x254   :  { %1825 = vmatpush1.bf16.msra.mxu0 %v2450_v53  ;;  %1866 = vmatpush1.bf16.msra.mxu1 %v2453_v54 }
 0x255   :  { %1826 = vmatprep.subr.bf16.mxu0 %v2458_v55  ;;  %1867 = vmatprep.subr.bf16.mxu1 %v2461_v56 }
 0x258   :  { %1827 = vmatpush1.bf16.msra.mxu0 %v2456_v57  ;;  %1868 = vmatpush1.bf16.msra.mxu1 %v2459_v58 }
 0x259   :  { %1828 = vmatprep.subr.bf16.mxu0 %v2464_v59  ;;  %1869 = vmatprep.subr.bf16.mxu1 %v2467_v60 }
 0x25c   :  { %1829 = vmatpush1.bf16.msra.mxu0 %v2462_v61  ;;  %1870 = vmatpush1.bf16.msra.mxu1 %v2465_v62 }
 0x25d   :  { %1830 = vmatprep.subr.bf16.mxu0 %v2470_v63  ;;  %1871 = vmatprep.subr.bf16.mxu1 %v2473_v0 }
 0x260   :  { %1831 = vmatpush2.bf16.msra.mxu0 %v2468_v1  ;;  %1872 = vmatpush2.bf16.msra.mxu1 %v2471_v2 }
 0x261   :  { %1832 = vmatprep.subr.bf16.mxu0 %v2476_v3  ;;  %1873 = vmatprep.subr.bf16.mxu1 %v2479_v4 }
 0x264   :  { %1833 = vmatpush2.bf16.msra.mxu0 %v2474_v5  ;;  %1874 = vmatpush2.bf16.msra.mxu1 %v2477_v6 }
 0x265   :  { %1834 = vmatprep.subr.bf16.mxu0 %v2482_v10  ;;  %1875 = vmatprep.subr.bf16.mxu1 %v2485_v13 }
 0x268   :  { %1835 = vmatpush2.bf16.msra.mxu0 %v2480_v14  ;;  %1876 = vmatpush2.bf16.msra.mxu1 %v2483_v15 }
 0x269   :  { %1836 = vmatprep.subr.bf16.mxu0 %v2488_v16  ;;  %1877 = vmatprep.subr.bf16.mxu1 %v2491_v17 }
 0x26c   :  { %1837 = vmatpush2.bf16.msra.mxu0 %v2486_v18  ;;  %1878 = vmatpush2.bf16.msra.mxu1 %v2489_v19 }
 0x26d   :  { %1838 = vmatprep.subr.bf16.mxu0 %v2494_v20  ;;  %1879 = vmatprep.subr.bf16.mxu1 %v2497_v21 }
 0x270   :  { %1839 = vmatpush2.bf16.msra.mxu0 %v2492_v22  ;;  %1880 = vmatpush2.bf16.msra.mxu1 %v2495_v23 }
 0x271   :  { %1840 = vmatprep.subr.bf16.mxu0 %v2500_v24  ;;  %1881 = vmatprep.subr.bf16.mxu1 %v2503_v25 }
 0x274   :  { %1841 = vmatpush2.bf16.msra.mxu0 %v2498_v26  ;;  %1882 = vmatpush2.bf16.msra.mxu1 %v2501_v27 }
 0x275   :  { %1842 = vmatprep.subr.bf16.mxu0 %v2506_v28  ;;  %1883 = vmatprep.subr.bf16.mxu1 %v2509_v29 }
 0x278   :  { %1843 = vmatpush2.bf16.msra.mxu0 %v2504_v30  ;;  %1884 = vmatpush2.bf16.msra.mxu1 %v2507_v31 }
 0x279   :  { %1844 = vmatprep.subr.bf16.mxu0 %v2512_v32  ;;  %1885 = vmatprep.subr.bf16.mxu1 %v2515_v33 }
 0x27c   :  { %1845 = vmatpush2.bf16.msra.mxu0 %v2510_v34  ;;  %1886 = vmatpush2.bf16.msra.mxu1 %v2513_v35 }
 0x2ff   :  { %v1362_v41 = vpop.f32.mrf.mxu0  ;;  %v1403_v42 = vpop.f32.mrf.mxu1 }
 0x300   :  { %v1363_v43 = vadd.f32 %v1362_v41, %v1151_v37  ;;  %v1404_v44 = vadd.f32 %v1403_v42, %v1159_v38 }
 0x301   :  { %v1364_v45 = vpop.f32.mrf.mxu0  ;;  %v1405_v46 = vpop.f32.mrf.mxu1 }
 0x302   :  { %v1365_v47 = vadd.f32 %v1364_v45, %v1155_v39  ;;  %v1406_v48 = vadd.f32 %v1405_v46, %v1163_v40  ;;  %v1410_v49 = vmax.f32 %v1363_v43, 0.0  ;;  %v1412_v50 = vmax.f32 %v1404_v44, 0.0 }
 0x303   :  { %v1366_v51 = vpop.f32.mrf.mxu0  ;;  %v1407_v52 = vpop.f32.mrf.mxu1 }
 0x304   :  { %v1411_v53 = vmax.f32 %v1365_v47, 0.0  ;;  %v1413_v54 = vmax.f32 %v1406_v48, 0.0  ;;  %v1414_v7 = vpack.c.bf16 %v1410_v49, %v1410_v49  ;;  %v1416_v12 = vpack.c.bf16 %v1412_v50, %v1412_v50 }
 0x305   :  { %v1367_v9 = vpop.f32.mrf.mxu0  ;;  %v1408_v55 = vpop.f32.mrf.mxu1 }
 0x306   :  { %v1415_v56 = vpack.c.bf16 %v1411_v53, %v1411_v53  ;;  %v1417_v57 = vpack.c.bf16 %v1413_v54, %v1413_v54 }
 0x308   :  { %1846 = vmatprep.mubr.bf16.mxu0 %v1415_v56  ;;  %1887 = vmatprep.mubr.bf16.mxu1 %v1417_v57 }
 0x309   :  { %1847 = vmatmul.mubr.bf16.vlgmr.msra.gmra.mxu0 %v1414_v7  ;;  %1888 = vmatmul.mubr.bf16.vlgmr.msra.gmra.mxu1 %v1416_v12 }
 0x30a   :  { %2677 = shalt.err (!%p2674_p11)
}
 0x30b   :  { %1929 = dma.vmem_to_hbm [thread:$0]  %s1927_s26, 256, %s2871_s11, [#allocation16]   ;;  %v1482_v58 = vld [vmem:[%s2869_s9] sm:$0x3] }
 0x30c   :  { %v1487_v59 = vrot.slane %v1482_v58, %v2822_v8  ;;  %v1491_v60 = vrot.slane %v1482_v58, %v2829_v11  ;;  %s2731_s9 = smov [#allocation14]  }
 0x30d   :  { %s1916_s11 = sshll.u32 %s2731_s9, 4  ;;  %s1917_s11 = int_to_ptr.vmem [resolvable:$true] %s1916_s11 }
 0x30e   :  { %s2686_s18 = scalar_lea.vmem %s1917_s11, 256  ;;  %p2691_p13 = scmp.lt.s32.totalorder %s1917_s11, %s1917_s11 }
 0x30f   :  { %p2687_p12 = scmp.ne.s32.totalorder %s1917_s11, %s2686_s18  ;;  %p2692_p0 = scmp.lt.s32.totalorder %s2686_s18, %s2686_s18 }
 0x311   :  { %p2693_p1 = por %p2692_p0, %p2691_p13 }
 0x313   :  { %p2694_p2 = pnand %p2693_p1, %p2687_p12 }
 0x3c9   :  { %v1848_v61 = vpop.f32.mrf.mxu0  ;;  %v1889_v62 = vpop.f32.mrf.mxu1 }
 0x3ca   :  { %v1849_v63 = vadd.f32 %v1848_v61, %v1487_v59 }
 0x3cb   :  { %v1850_v0 = vpop.f32.mrf.mxu0  ;;  %v1891_v1 = vpop.f32.mrf.mxu1 }
 0x3cc   :  { %v1890_v2 = vadd.f32 %v1889_v62, %v1849_v63  ;;  %v1851_v3 = vadd.f32 %v1850_v0, %v1491_v60 }
 0x3cd   :  { %v1852_v4 = vpop.f32.mrf.mxu0  ;;  %v1893_v5 = vpop.f32.mrf.mxu1 }
 0x3ce   :  { %v1896_v6 = vsub.f32 0.0, %v1890_v2  ;;  %v1892_v10 = vadd.f32 %v1891_v1, %v1851_v3 }
 0x3cf   :  { %v1853_v13 = vpop.f32.mrf.mxu0  ;;  %v1894_v14 = vpop.f32.mrf.mxu1 }
 0x3d0   :  { %v1898_v15 = vmul.f32 1.442695, %v1896_v6  ;;  %v1897_v16 = vsub.f32 0.0, %v1892_v10 }
 0x3d2   :  { %2518 = vpow2.f32 %v1898_v15  ;;  %v1900_v17 = vmul.f32 1.442695, %v1897_v16 }
 0x3d4   :  { %2520 = vpow2.f32 %v1900_v17 }
 0x3df   :  { %v2519_v8 = vpop.eup %2518 }
 0x3e0   :  { %v1902_v11 = vadd.f32 1.0, %v2519_v8 }
 0x3e1   :  { %v2521_v18 = vpop.eup %2520 }
 0x3e2   :  { %2522 = vrcp.f32 %v1902_v11  ;;  %v1903_v19 = vadd.f32 1.0, %v2521_v18 }
 0x3e4   :  { %2524 = vrcp.f32 %v1903_v19 }
 0x3ef   :  { %v2523_v20 = vpop.eup %2522 }
 0x3f0   :  { %1906 = vst [vmem:[#allocation14] sm:$0xff] %v2523_v20 }
 0x3f1   :  { %v2525_v21 = vpop.eup %2524 }
 0x3f2   :  { %1907 = vst [vmem:[#allocation14 + $0x8] sm:$0xff] %v2525_v21 }
 0x3f3   :  { %2697 = shalt.err (!%p2694_p2)
}
 0x3f4   :  { %1919 = dma.vmem_to_hbm [thread:$0]  %s1917_s11, 256, %s2870_s10, [#allocation4]  }
 0x3f5   :  { %2714 = dma.done.wait [#allocation4], 256  }
 0x3f6   :  { %2715 = vsyncadd [#allocation4], 4294967040 }
 0x3f7   :  { %2716 = dma.done.wait [#allocation16], 256  }
 0x3f8   :  { %2717 = vsyncadd [#allocation16], 4294967040 }
 0x3f9   :  { %1936 = vsyncpa [#allocation3], 1 }
 0x3fa   :  { %1937 = vsyncpa [#allocation6], 1 }
 0x3fb   :  { %1938 = vsyncpa [#allocation9], 1 }
 0x3fc   :  { %1939 = vsyncpa [#allocation12], 1 }
 0x3fd   :  { %1940 = vsyncpa [#allocation4], 1 }
 0x3fe   :  { %1941 = vsyncpa [#allocation16], 1 }

</bundles_post_ra>
